<compile_context>
chip_gen: v5e
topology: v5e:2x2
jax: 0.10.0
libtpu: 0.0.40
codegen_flags: <defaults>
</compile_context>

<pallas_src>
import functools

import jax
import jax.numpy as jnp
from jax.experimental import pallas as pl
from jax.experimental.pallas import tpu as pltpu


def _round_up(x, m):
    return ((x + m - 1) // m) * m


def energy_lse_kernel(x_ref, w_ref, b_ref, lse_ref, m_sc, l_sc, *, exp_in_bf16):
    """grid = (row_tiles, vocab_tiles); vocab axis (last) is the reduction."""
    j = pl.program_id(1)

    # Init the per-row-tile online-logsumexp state on the first vocab step.
    @pl.when(j == 0)
    def _():
        m_sc[...] = jnp.full_like(m_sc, -jnp.inf)
        l_sc[...] = jnp.zeros_like(l_sc)

    # model(sample): bf16 MXU matmul, f32 accumulate; bias added in f32.
    logits = (
        jnp.dot(x_ref[...], w_ref[...], preferred_element_type=jnp.float32)
        + b_ref[...]
    )  # (tm, tv) f32

    # Online (streaming) logsumexp update over the vocab tiles.
    m_prev = m_sc[...]
    m_new = jnp.maximum(m_prev, jnp.max(logits, axis=-1, keepdims=True))
    alpha = jnp.exp(m_prev - m_new)
    z = logits - m_new
    if exp_in_bf16:
        # v6e/v7x EUP supports bf16 -> ~2x transcendental throughput on the
        # dominant exp.  Gated: ~0.4% per-term error (keep max/sum in f32).
        p = jnp.exp(z.astype(jnp.bfloat16)).astype(jnp.float32)
    else:
        p = jnp.exp(z)
    l_sc[...] = alpha * l_sc[...] + jnp.sum(p, axis=-1, keepdims=True)
    m_sc[...] = m_new

    # Finalize: per-row logsumexp for this row tile.
    @pl.when(j == pl.num_programs(1) - 1)
    def _():
        lse_ref[...] = m_sc[...] + jnp.log(l_sc[...])


def make_energy_fn(w, b, *, tm=512, tv=1024, exp_in_bf16=False):
    """Builds energy(sample) = -(sample.reshape(N,H) @ w + b).logsumexp(-1).sum().

    Weight cast/padding is done ONCE here (hoisted out of the hot path).
    """
    H, V = w.shape

    # Vocab tiling: lane-dense tiles; prefer multiples of 256 (v6e/v7x MXU
    # result tiles; also a multiple of 128 for v5e), never exceeding padded V.
    tv = min(_round_up(tv, 256), _round_up(V, 128))
    v_pad = _round_up(V, tv)

    # --- one-time parameter preparation (no per-call HBM cast/pad pass) ---
    w_p = jnp.zeros((H, v_pad), jnp.bfloat16).at[:, :V].set(w.astype(jnp.bfloat16))
    # Padded vocab columns get a huge negative bias so exp() contributes ~0.
    b_p = jnp.full((1, v_pad), -1e30, jnp.float32).at[0, :V].set(
        b.astype(jnp.float32)
    )

    kernel = functools.partial(energy_lse_kernel, exp_in_bf16=exp_in_bf16)

    @jax.jit
    def energy(sample):
        B, T, H_ = sample.shape
        N = B * T

        # Row tiling: large tiles cut W re-streaming (one full W read per row
        # tile, key on v5e); but guarantee >= 2 row tiles whenever possible so
        # the "parallel" axis can spread across v7x's two TensorCores.
        tm_i = min(tm, _round_up(max(N, 1), 16))
        if N > 16 and -(-N // tm_i) < 2:
            tm_i = _round_up(-(-N // 2), 16)
        tm_i = max(tm_i, 16)
        n_pad = _round_up(N, tm_i)
        n_row_tiles = n_pad // tm_i
        n_v_tiles = v_pad // tv

        # bf16 MXU input; zero-pad rows as needed (padded rows dropped later).
        x = jnp.zeros((n_pad, H_), jnp.bfloat16).at[:N].set(
            sample.reshape(N, H_).astype(jnp.bfloat16)
        )

        # Explicit VMEM budget (double-buffered inputs + f32 temporaries),
        # clamped to v7x's 64 MiB physical VMEM; >= 32 MiB helps v5e's 16 MiB
        # default scoped limit.
        vmem_est = (
            2 * tm_i * H_ * 2      # x double buffer (bf16)
            + 2 * H_ * tv * 2      # W double buffer (bf16)
            + 2 * tv * 4           # bias double buffer (f32)
            + 2 * tm_i * 4         # lse output double buffer
            + 2 * tm_i * 4         # m/l scratch
            + 4 * tm_i * tv * 4    # logits / p f32 temporaries (headroom)
        )
        vmem_limit = min(
            max(_round_up(vmem_est, 1 << 20) + (8 << 20), 32 << 20), 64 << 20
        )

        cost = pl.CostEstimate(
            flops=2 * n_pad * H_ * v_pad,
            transcendentals=n_pad * v_pad,
            bytes_accessed=(
                x.size * 2                     # sample rows, read once
                + n_row_tiles * w_p.size * 2   # W re-streamed per row tile
                + n_row_tiles * b_p.size * 4   # bias re-streamed per row tile
                + n_pad * 4                    # per-row lse output
            ),
        )

        lse = pl.pallas_call(
            kernel,
            out_shape=jax.ShapeDtypeStruct((n_pad, 1), jnp.float32),
            grid=(n_row_tiles, n_v_tiles),
            in_specs=[
                pl.BlockSpec((tm_i, H_), lambda i, j: (i, 0)),  # row tile of x
                pl.BlockSpec((H_, tv), lambda i, j: (0, j)),    # vocab tile of W
                pl.BlockSpec((1, tv), lambda i, j: (0, j)),     # vocab tile of b
            ],
            out_specs=pl.BlockSpec((tm_i, 1), lambda i, j: (i, 0)),  # per-row lse
            scratch_shapes=[
                pltpu.VMEM((tm_i, 1), jnp.float32),  # running max
                pltpu.VMEM((tm_i, 1), jnp.float32),  # running sum
            ],
            compiler_params=pltpu.CompilerParams(
                dimension_semantics=("parallel", "arbitrary"),
                vmem_limit_bytes=vmem_limit,
            ),
            cost_estimate=cost,
        )(x, w_p, b_p)

        # Tiny final reduction + negation (padded rows dropped).
        return -jnp.sum(lse[:N, 0])

    return energy


if __name__ == "__main__":
    # Small shapes: batch=2, seq=8, hidden=32, vocab=128 (lane-dense).
    B, T, H, V = 2, 8, 32, 128
    key = jax.random.PRNGKey(0)
    k_x, k_w, k_b = jax.random.split(key, 3)

    sample = jax.random.normal(k_x, (B, T, H), dtype=jnp.float32)
    # Deterministic synthetic "model" parameters (no checkpoint loading).
    # TODO(synk): the PyTorch module takes an arbitrary `model`; a linear
    # classifier (logits = sample @ W + b) stands in for it here.
    w = jax.random.normal(k_w, (H, V), dtype=jnp.float32) * 0.1
    b = jax.random.normal(k_b, (V,), dtype=jnp.float32) * 0.01

    energy = make_energy_fn(w, b)  # one-time weight cast/pad (hoisted)
    out = jax.block_until_ready(energy(sample))

    # Pure-JAX reference of the same forward pass (matching the bf16 rounding
    # the MXU sees on its inputs; accumulation stays f32).
    xb = sample.reshape(B * T, H).astype(jnp.bfloat16).astype(jnp.float32)
    wb = w.astype(jnp.bfloat16).astype(jnp.float32)
    logits_ref = xb @ wb + b
    ref = -jnp.sum(jax.scipy.special.logsumexp(logits_ref, axis=-1))

    assert jnp.allclose(out, ref, rtol=1e-4, atol=1e-3), (out, ref)
    print("KERNEL_OK")
</pallas_src>

<mosaic_0001>
module attributes {stable_mosaic.version = 11 : i64} {
  func.func @energy_lse_kernel(%arg0: i32, %arg1: i32, %arg2: memref<16x32xbf16, #tpu.memory_space<vmem>>, %arg3: memref<32x128xbf16, #tpu.memory_space<vmem>>, %arg4: memref<1x128xf32, #tpu.memory_space<vmem>>, %arg5: memref<16x1xf32, #tpu.memory_space<vmem>>, %arg6: memref<16x1xf32, #tpu.memory_space<vmem>>, %arg7: memref<16x1xf32, #tpu.memory_space<vmem>>) attributes {dimension_semantics = [#tpu.dimension_semantics<parallel>, #tpu.dimension_semantics<arbitrary>], iteration_bounds = array<i64: 1, 1>, scalar_prefetch = 0 : i64, scratch_operands = 2 : i64, tpu.core_type = #tpu.core_type<tc>, window_params = [{transform_indices = @transform_0, window_bounds = array<i64: 16, 32>}, {transform_indices = @transform_1, window_bounds = array<i64: 32, 128>}, {transform_indices = @transform_2, window_bounds = array<i64: 1, 128>}, {transform_indices = @transform_3, window_bounds = array<i64: 16, 1>}]} {
    %c0_i32 = arith.constant 0 : i32
    %0 = arith.cmpi eq, %arg1, %c0_i32 : i32
    %1 = arith.extui %0 : i1 to i32
    %c0_i32_0 = arith.constant 0 : i32
    %2 = arith.cmpi ne, %1, %c0_i32_0 : i32
    scf.if %2 {
      %cst_18 = arith.constant 0xFF800000 : f32
      %28 = vector.broadcast %cst_18 : f32 to vector<16x1xf32>
      %c0_19 = arith.constant 0 : index
      %c0_20 = arith.constant 0 : index
      %29 = vector.load %arg6[%c0_19, %c0_20] : memref<16x1xf32, #tpu.memory_space<vmem>>, vector<16x1xf32>
      tpu.vector_store %arg6[%c0_19, %c0_20], %28 {strides = array<i32>} : memref<16x1xf32, #tpu.memory_space<vmem>>, vector<16x1xf32>,
      %cst_21 = arith.constant 0.000000e+00 : f32
      %30 = vector.broadcast %cst_21 : f32 to vector<16x1xf32>
      %c0_22 = arith.constant 0 : index
      %c0_23 = arith.constant 0 : index
      %31 = vector.load %arg7[%c0_22, %c0_23] : memref<16x1xf32, #tpu.memory_space<vmem>>, vector<16x1xf32>
      tpu.vector_store %arg7[%c0_22, %c0_23], %30 {strides = array<i32>} : memref<16x1xf32, #tpu.memory_space<vmem>>, vector<16x1xf32>,
    } else {
    }
    %c0 = arith.constant 0 : index
    %c0_1 = arith.constant 0 : index
    %3 = vector.load %arg2[%c0, %c0_1] : memref<16x32xbf16, #tpu.memory_space<vmem>>, vector<16x32xbf16>
    %c0_2 = arith.constant 0 : index
    %c0_3 = arith.constant 0 : index
    %4 = vector.load %arg3[%c0_2, %c0_3] : memref<32x128xbf16, #tpu.memory_space<vmem>>, vector<32x128xbf16>
    %cst = arith.constant dense<0.000000e+00> : vector<16x128xf32>
    %5 = tpu.matmul %3, %4, %cst {dimension_numbers = #tpu.dot_dimension_numbers<[1], [0], [0], [1], [0, 0, 1, 1], [], []>} : vector<16x32xbf16>, vector<32x128xbf16>, vector<16x128xf32> -> vector<16x128xf32>
    %c0_4 = arith.constant 0 : index
    %c0_5 = arith.constant 0 : index
    %6 = vector.load %arg4[%c0_4, %c0_5] : memref<1x128xf32, #tpu.memory_space<vmem>>, vector<1x128xf32>
    %7 = vector.broadcast %6 : vector<1x128xf32> to vector<16x128xf32>
    %8 = arith.addf %5, %7 : vector<16x128xf32>
    %c0_6 = arith.constant 0 : index
    %c0_7 = arith.constant 0 : index
    %9 = vector.load %arg6[%c0_6, %c0_7] : memref<16x1xf32, #tpu.memory_space<vmem>>, vector<16x1xf32>
    %cst_8 = arith.constant dense<0xFF800000> : vector<16xf32>
    %10 = vector.multi_reduction <maximumf>, %8, %cst_8 [1] : vector<16x128xf32> to vector<16xf32>
    %11 = vector.shape_cast %10 : vector<16xf32> to vector<16x1xf32>
    %12 = arith.maximumf %9, %11 : vector<16x1xf32>
    %13 = arith.subf %9, %12 : vector<16x1xf32>
    %14 = math.exp %13 : vector<16x1xf32>
    %15 = vector.broadcast %12 : vector<16x1xf32> to vector<16x128xf32>
    %16 = arith.subf %8, %15 : vector<16x128xf32>
    %17 = math.exp %16 : vector<16x128xf32>
    %c0_9 = arith.constant 0 : index
    %c0_10 = arith.constant 0 : index
    %18 = vector.load %arg7[%c0_9, %c0_10] : memref<16x1xf32, #tpu.memory_space<vmem>>, vector<16x1xf32>
    %19 = arith.mulf %14, %18 : vector<16x1xf32>
    %cst_11 = arith.constant dense<0.000000e+00> : vector<16xf32>
    %20 = vector.multi_reduction <add>, %17, %cst_11 [1] : vector<16x128xf32> to vector<16xf32>
    %21 = vector.shape_cast %20 : vector<16xf32> to vector<16x1xf32>
    %22 = arith.addf %19, %21 : vector<16x1xf32>
    %c0_12 = arith.constant 0 : index
    %c0_13 = arith.constant 0 : index
    %23 = vector.load %arg7[%c0_12, %c0_13] : memref<16x1xf32, #tpu.memory_space<vmem>>, vector<16x1xf32>
    tpu.vector_store %arg7[%c0_12, %c0_13], %22 {strides = array<i32>} : memref<16x1xf32, #tpu.memory_space<vmem>>, vector<16x1xf32>,
    %c0_14 = arith.constant 0 : index
    %c0_15 = arith.constant 0 : index
    %24 = vector.load %arg6[%c0_14, %c0_15] : memref<16x1xf32, #tpu.memory_space<vmem>>, vector<16x1xf32>
    tpu.vector_store %arg6[%c0_14, %c0_15], %12 {strides = array<i32>} : memref<16x1xf32, #tpu.memory_space<vmem>>, vector<16x1xf32>,
    %c0_i32_16 = arith.constant 0 : i32
    %25 = arith.cmpi eq, %arg1, %c0_i32_16 : i32
    %26 = arith.extui %25 : i1 to i32
    %c0_i32_17 = arith.constant 0 : i32
    %27 = arith.cmpi ne, %26, %c0_i32_17 : i32
    scf.if %27 {
      %c0_18 = arith.constant 0 : index
      %c0_19 = arith.constant 0 : index
      %28 = vector.load %arg6[%c0_18, %c0_19] : memref<16x1xf32, #tpu.memory_space<vmem>>, vector<16x1xf32>
      %c0_20 = arith.constant 0 : index
      %c0_21 = arith.constant 0 : index
      %29 = vector.load %arg7[%c0_20, %c0_21] : memref<16x1xf32, #tpu.memory_space<vmem>>, vector<16x1xf32>
      %30 = math.log %29 : vector<16x1xf32>
      %31 = arith.addf %28, %30 : vector<16x1xf32>
      %c0_22 = arith.constant 0 : index
      %c0_23 = arith.constant 0 : index
      %32 = vector.load %arg5[%c0_22, %c0_23] : memref<16x1xf32, #tpu.memory_space<vmem>>, vector<16x1xf32>
      tpu.vector_store %arg5[%c0_22, %c0_23], %31 {strides = array<i32>} : memref<16x1xf32, #tpu.memory_space<vmem>>, vector<16x1xf32>,
    } else {
    }
    return
  }
  func.func @transform_0(%arg0: i32, %arg1: i32) -> (i32, i32) {
    %c0_i32 = arith.constant 0 : i32
    %c0_i32_0 = arith.constant 0 : i32
    return %arg0, %c0_i32 : i32, i32
  }
  func.func @transform_1(%arg0: i32, %arg1: i32) -> (i32, i32) {
    %c0_i32 = arith.constant 0 : i32
    %c0_i32_0 = arith.constant 0 : i32
    return %c0_i32, %arg1 : i32, i32
  }
  func.func @transform_2(%arg0: i32, %arg1: i32) -> (i32, i32) {
    %c0_i32 = arith.constant 0 : i32
    %c0_i32_0 = arith.constant 0 : i32
    return %c0_i32, %arg1 : i32, i32
  }
  func.func @transform_3(%arg0: i32, %arg1: i32) -> (i32, i32) {
    %c0_i32 = arith.constant 0 : i32
    %c0_i32_0 = arith.constant 0 : i32
    return %arg0, %c0_i32 : i32, i32
  }
}

</mosaic_0001>

<bundles_post_ra>
// kernel: energy.1
= control target key start
LH: loop header
LB: loop body
LE: loop exit
PB: predicated region body
PF: predicated region fallthrough
CT: control target
= control target key end

     0   :  { %vm51_vm0 = vcmask 261120   ;;  %vm19_vm1 = vcmask 7168   ;;  %v167_v3 = vmov -inf   ;;  %v168_v9 = vmov 0   ;;  %s218_s1 = inlined_call_operand.vmem [shape: bf16[32,128], index: 1, kind: input, shape index: {}]   ;;  %s219_s2 = inlined_call_operand.vmem [shape: f32[1,128], index: 2, kind: input, shape index: {}]   ;;  %s220_s0 = inlined_call_operand.vmem [shape: bf16[16,32], index: 0, kind: input, shape index: {}]   ;;  %s221_s3 = inlined_call_operand.vmem [shape: f32[16,1], index: 3, kind: output, shape index: {}]  }
   0x1   :  { %v148_v0 = vld [vmem:[%s218_s1 + $0x8] sm:$0xff]  ;;  %v147_v1 = vld [vmem:[%s218_s1] sm:$0xff]  ;;  %20 = vst.msk [vmem:[#allocation2] sm:$0xff] %vm19_vm1, %v167_v3  ;;  %152 = vset.pattern.permute.xlu1 %v168_v9  ;;  %153 = vset.pattern.permute.xlu0 %v168_v9  ;;  %v169_v10 = vmov 0.0  }
   0x2   :  { %61 = vmatpush.bf16.msra.mxu0 %v148_v0  ;;  %v146_v2 = vld [vmem:[%s220_s0] sm:$0xff]  ;;  %21 = vst.msk [vmem:[#allocation2 + $0x8] sm:$0xff] %vm19_vm1, %v167_v3 }
   0x3   :  { %v154_v4 = vld [vmem:[%s219_s2] ss:$0 sm:$0xff]  ;;  %22 = vst.msk [vmem:[#allocation3] sm:$0xff] %vm19_vm1, %v169_v10 }
   0x4   :  { %23 = vst.msk [vmem:[#allocation3 + $0x8] sm:$0xff] %vm19_vm1, %v169_v10 }
   0x6   :  { %62 = vmatpush.bf16.msra.mxu0 %v147_v1 }
   0x8   :  { %v69_v11 = vld [vmem:[#allocation2] sm:$0xff] }
   0x9   :  { %145 = vmatmul.msk.bf16.vlgmr.msra.gmra.mxu0 %vm51_vm0, %v146_v2  ;;  %v70_v15 = vld [vmem:[#allocation2 + $0x8] sm:$0xff] }
   0xa   :  { %v99_v30 = vld [vmem:[#allocation3] sm:$0xff] }
   0xb   :  { %v100_v35 = vld [vmem:[#allocation3 + $0x8] sm:$0xff] }
  0x86   :  { %v64_v5 = vpop.f32.mrf.mxu0 }
  0x87   :  { %v65_v6 = vadd.f32 %v154_v4, %v64_v5 }
  0x89   :  { %71 = vmax.xlane.f32.xlu0 %v65_v6 }
  0x8e   :  { %v66_v7 = vpop.f32.mrf.mxu0 }
  0x8f   :  { %v67_v8 = vadd.f32 %v154_v4, %v66_v7 }
  0x91   :  { %73 = vmax.xlane.f32.xlu0 %v67_v8 }
  0xfc   :  { %v72_v12 = vpop.xlane.xlu0 %71 }
  0xfd   :  { %v75_v13 = vmax.f32 %v69_v11, %v72_v12 }
  0xff   :  { %v77_v14 = vsub.f32 %v69_v11, %v75_v13  ;;  %112 = vst.msk [vmem:[#allocation2] sm:$0xff] %vm19_vm1, %v75_v13  ;;  %85 = vperm.xlu1 %152, %v75_v13  }
 0x101   :  { %v79_v27 = vmul.f32 1.442695, %v77_v14 }
 0x104   :  { %v74_v16 = vpop.xlane.xlu0 %73 }
 0x105   :  { %v76_v17 = vmax.f32 %v70_v15, %v74_v16 }
 0x106   :  { %v117_v43 = vld [vmem:[#allocation2] sm:$0xff] }
 0x107   :  { %v78_v18 = vsub.f32 %v70_v15, %v76_v17  ;;  %113 = vst.msk [vmem:[#allocation2 + $0x8] sm:$0xff] %vm19_vm1, %v76_v17  ;;  %90 = vperm.xlu1 %152, %v76_v17  }
 0x109   :  { %v81_v28 = vmul.f32 1.442695, %v78_v18 }
 0x10e   :  { %v118_v47 = vld [vmem:[#allocation2 + $0x8] sm:$0xff] }
 0x171   :  { %v86_v19 = vpop.permute.xlu1 %85 }
 0x172   :  { %v93_v20 = vsub.f32 %v65_v6, %v86_v19 }
 0x174   :  { %v95_v21 = vmul.f32 1.442695, %v93_v20 }
 0x176   :  { %155 = vpow2.f32 %v95_v21 }
 0x179   :  { %v91_v22 = vpop.permute.xlu1 %90 }
 0x17a   :  { %v94_v23 = vsub.f32 %v67_v8, %v91_v22 }
 0x17c   :  { %v156_v24 = vpop.eup %155  ;;  %v97_v25 = vmul.f32 1.442695, %v94_v23 }
 0x17d   :  { %103 = vadd.xlane.f32.xlu2 %v156_v24 }
 0x17e   :  { %157 = vpow2.f32 %v97_v25 }
 0x17f   :  { %159 = vpow2.f32 %v79_v27 }
 0x180   :  { %161 = vpow2.f32 %v81_v28 }
 0x184   :  { %v158_v26 = vpop.eup %157 }
 0x185   :  { %105 = vadd.xlane.f32.xlu2 %v158_v26  ;;  %v160_v29 = vpop.eup %159 }
 0x186   :  { %v101_v31 = vmul.f32 %v160_v29, %v99_v30  ;;  %v162_v34 = vpop.eup %161 }
 0x187   :  { %v102_v36 = vmul.f32 %v162_v34, %v100_v35 }
 0x1f0   :  { %v104_v32 = vpop.xlane.xlu2 %103 }
 0x1f1   :  { %v107_v33 = vadd.f32 %v104_v32, %v101_v31 }
 0x1f3   :  { %110 = vst.msk [vmem:[#allocation3] sm:$0xff] %vm19_vm1, %v107_v33 }
 0x1f8   :  { %v106_v37 = vpop.xlane.xlu2 %105 }
 0x1f9   :  { %v108_v38 = vadd.f32 %v106_v37, %v102_v36 }
 0x1fa   :  { %v119_v39 = vld [vmem:[#allocation3] sm:$0xff] }
 0x1fb   :  { %163 = vlog2.f32 %v119_v39  ;;  %111 = vst.msk [vmem:[#allocation3 + $0x8] sm:$0xff] %vm19_vm1, %v108_v38 }
 0x201   :  { %v164_v40 = vpop.eup %163 }
 0x202   :  { %v122_v41 = vmul.f32 0.6931472, %v164_v40  ;;  %v120_v42 = vld [vmem:[#allocation3 + $0x8] sm:$0xff] }
 0x203   :  { %165 = vlog2.f32 %v120_v42 }
 0x204   :  { %v125_v44 = vadd.f32 %v122_v41, %v117_v43 }
 0x206   :  { %127 = vst.msk [vmem:[%s221_s3] sm:$0xff] %vm19_vm1, %v125_v44 }
 0x209   :  { %v166_v45 = vpop.eup %165 }
 0x20a   :  { %v124_v46 = vmul.f32 0.6931472, %v166_v45 }
 0x20c   :  { %v126_v48 = vadd.f32 %v124_v46, %v118_v47 }
 0x20e   :  { %128 = vst.msk [vmem:[%s221_s3 + $0x8] sm:$0xff] %vm19_vm1, %v126_v48 }

</bundles_post_ra>
